<compile_context>
chip_gen: v7x
topology: tpu7x:2x2x1
jax: 0.10.0
libtpu: 0.0.40
codegen_flags: <defaults>
</compile_context>

<pallas_src>
import functools

import jax
import jax.numpy as jnp
from jax.experimental import pallas as pl
from jax.experimental.pallas import tpu as pltpu


def _make_fused_mlp_kernel(n_layers, pad_cols, negative_slope=0.01, eps=1e-5):
    """Kernel computing n_layers of LeakyReLU(LayerNorm(h @ W + b))."""

    def kernel(x_ref, *refs):
        # refs = (w0, p0, w1, p1, ..., out_ref);  p_l = [bias; gamma; beta]
        out_ref = refs[-1]
        h = x_ref[...]                                     # (TB, n_in) storage dtype

        for l in range(n_layers):                          # static unroll (small L)
            w = refs[2 * l][...]                           # (n_in_l, n_out_l)
            p = refs[2 * l + 1][...].astype(jnp.float32)   # (3, n_out_l)
            b = p[0:1, :]
            g = p[1:2, :]
            be = p[2:3, :]

            # Linear (MXU): operands in storage dtype, f32 accumulation.
            z = jnp.dot(h.astype(w.dtype), w,
                        preferred_element_type=jnp.float32) + b

            # LayerNorm over last dim (biased variance, eps=1e-5); affine
            # gamma folded into the rsqrt scale.
            mean = jnp.mean(z, axis=-1, keepdims=True)
            c = z - mean
            var = jnp.mean(c * c, axis=-1, keepdims=True)
            scale = jax.lax.rsqrt(var + eps) * g
            zn = c * scale + be

            # LeakyReLU(0.01): mul + max (2 VPU ops) instead of cmp/mul/select.
            h = jnp.maximum(zn, negative_slope * zn)

            # Dropout: eval-mode identity.

        if pad_cols:
            # Lane-dense output slab: zero-pad the true features to 128 lanes so
            # the HBM writeback uses unmasked full-lane stores.
            h = jnp.concatenate(
                [h, jnp.zeros((h.shape[0], pad_cols), h.dtype)], axis=-1)
        out_ref[...] = h.astype(out_ref.dtype)

    return kernel


def _round_up(v, m):
    return ((v + m - 1) // m) * m


def _choose_batch_tile(B, dtype, block_batch):
    """Batch tile: sublane-aligned, large, and >=2 grid steps when possible."""
    row_mult = 16 if dtype == jnp.bfloat16 else 8
    if B <= row_mult:
        return B                      # single full-batch tile (block == full dim)
    # At least 2 tiles so the "parallel" batch axis can shard across v7x's 2 TCs;
    # keep tiles big (>=block_batch/2-ish) to amortize per-step overhead on the
    # mem-bound path (v5e/v6e prefer 512-1024 rows).
    tb = min(block_batch, pl.cdiv(B, 2))
    tb = max(row_mult, (tb // row_mult) * row_mult)
    return min(tb, B)


def mlp_forward(x, params, *, block_batch=512):
    """Fused MLP forward: one pallas_call for all layers, batch-tiled grid.

    params: list of (w [n_in, n_out], b [n_out], gamma [n_out], beta [n_out]).
    Weights are stored pre-transposed ([n_in, n_out]) so the kernel does x @ W.
    """
    B, n_in = x.shape
    n_layers = len(params)
    n_out_final = params[-1][0].shape[1]

    # Lane-dense output width (multiple of 128); extra columns sliced off below.
    n_out_padded = max(128, _round_up(n_out_final, 128))
    pad_cols = n_out_padded - n_out_final

    TB = _choose_batch_tile(B, x.dtype, block_batch)
    grid = (pl.cdiv(B, TB),)

    in_specs = [pl.BlockSpec((TB, n_in), lambda i: (i, 0))]
    flat_inputs = [x]
    for (w, b, g, be) in params:
        ni, no = w.shape
        # Constant index_map -> weights / per-feature params stay VMEM-resident
        # across batch grid steps; only the x/out tiles stream.
        in_specs.append(pl.BlockSpec((ni, no), lambda i: (0, 0)))
        in_specs.append(pl.BlockSpec((3, no), lambda i: (0, 0)))
        flat_inputs += [w, jnp.stack([b, g, be], axis=0)]

    kernel = _make_fused_mlp_kernel(n_layers, pad_cols)

    out = pl.pallas_call(
        kernel,
        out_shape=jax.ShapeDtypeStruct((B, n_out_padded), x.dtype),
        grid=grid,
        in_specs=in_specs,
        out_specs=pl.BlockSpec((TB, n_out_padded), lambda i: (i, 0)),
        compiler_params=pltpu.CompilerParams(
            dimension_semantics=("parallel",),      # batch tiles are independent
            vmem_limit_bytes=48 * 1024 * 1024,      # headroom on v5e/v6e/v7x
        ),
    )(*flat_inputs)
    return out[:, :n_out_final] if pad_cols else out


def init_mlp_params(key, n_input, n_output, n_layers=1, n_hidden=128,
                    dtype=jnp.float32):
    """Deterministic parameter init matching FCLayers layer dims."""
    layers_dim = [n_input] + (n_layers - 1) * [n_hidden] + [n_output]
    params = []
    for n_in, n_out in zip(layers_dim[:-1], layers_dim[1:]):
        key, kw, kb = jax.random.split(key, 3)
        bound = 1.0 / jnp.sqrt(jnp.asarray(n_in, jnp.float32))
        w = jax.random.uniform(kw, (n_in, n_out), jnp.float32, -bound, bound)
        b = jax.random.uniform(kb, (n_out,), jnp.float32, -bound, bound)
        gamma = jnp.ones((n_out,), jnp.float32)
        beta = jnp.zeros((n_out,), jnp.float32)
        params.append((w.astype(dtype), b.astype(dtype),
                       gamma.astype(dtype), beta.astype(dtype)))
    return params


def mlp_forward_ref(x, params):
    """Pure-JAX reference (f32, highest matmul precision)."""
    h = x.astype(jnp.float32)
    for (w, b, gamma, beta) in params:
        z = jnp.dot(h, w.astype(jnp.float32),
                    precision=jax.lax.Precision.HIGHEST) + b.astype(jnp.float32)
        mean = jnp.mean(z, axis=-1, keepdims=True)
        var = jnp.mean((z - mean) ** 2, axis=-1, keepdims=True)
        zn = (z - mean) / jnp.sqrt(var + 1e-5)
        zn = zn * gamma.astype(jnp.float32) + beta.astype(jnp.float32)
        h = jnp.where(zn >= 0, zn, 0.01 * zn)
    return h


if __name__ == "__main__":
    key = jax.random.PRNGKey(0)
    # Small demo shapes consistent with the module defaults
    # (n_hidden=128 keeps the hidden feature dim lane-dense).
    n_input, n_hidden, n_output, n_layers = 32, 128, 16, 2
    batch = 8

    kx, kp = jax.random.split(key)
    x = jax.random.normal(kx, (batch, n_input), jnp.float32)
    params = init_mlp_params(kp, n_input, n_output, n_layers, n_hidden,
                             dtype=jnp.float32)
    ref = mlp_forward_ref(x, params)

    fwd = jax.jit(functools.partial(mlp_forward, block_batch=512))

    # f32 storage path.
    out = jax.block_until_ready(fwd(x, params))
    assert out.shape == (batch, n_output)
    assert jnp.allclose(out.astype(jnp.float32), ref, atol=1e-2, rtol=1e-2), \
        "f32 mismatch vs reference"

    # bf16 storage path (MXU-native on v5e/v6e/v7x; f32 accumulation + LN math).
    params_bf16 = [tuple(t.astype(jnp.bfloat16) for t in p) for p in params]
    out_bf16 = jax.block_until_ready(fwd(x.astype(jnp.bfloat16), params_bf16))
    assert out_bf16.shape == (batch, n_output)
    assert jnp.allclose(out_bf16.astype(jnp.float32), ref, atol=1e-1, rtol=1e-1), \
        "bf16 mismatch vs reference"

    print("KERNEL_OK")
</pallas_src>

<mosaic_0001>
module attributes {stable_mosaic.version = 11 : i64} {
  func.func @kernel(%arg0: i32, %arg1: memref<8x32xf32, #tpu.memory_space<vmem>>, %arg2: memref<32x128xf32, #tpu.memory_space<vmem>>, %arg3: memref<3x128xf32, #tpu.memory_space<vmem>>, %arg4: memref<128x16xf32, #tpu.memory_space<vmem>>, %arg5: memref<3x16xf32, #tpu.memory_space<vmem>>, %arg6: memref<8x128xf32, #tpu.memory_space<vmem>>) attributes {dimension_semantics = [#tpu.dimension_semantics<parallel>], iteration_bounds = array<i64: 1>, scalar_prefetch = 0 : i64, scratch_operands = 0 : i64, tpu.core_type = #tpu.core_type<tc>, window_params = [{transform_indices = @transform_0, window_bounds = array<i64: 8, 32>}, {pipeline_mode = #tpu.pipeline_mode<synchronous>, transform_indices = @transform_1, window_bounds = array<i64: 32, 128>}, {pipeline_mode = #tpu.pipeline_mode<synchronous>, transform_indices = @transform_2, window_bounds = array<i64: 3, 128>}, {pipeline_mode = #tpu.pipeline_mode<synchronous>, transform_indices = @transform_3, window_bounds = array<i64: 128, 16>}, {pipeline_mode = #tpu.pipeline_mode<synchronous>, transform_indices = @transform_4, window_bounds = array<i64: 3, 16>}, {transform_indices = @transform_5, window_bounds = array<i64: 8, 128>}]} {
    %c0 = arith.constant 0 : index
    %c0_0 = arith.constant 0 : index
    %0 = vector.load %arg1[%c0, %c0_0] : memref<8x32xf32, #tpu.memory_space<vmem>>, vector<8x32xf32>
    %c0_1 = arith.constant 0 : index
    %c0_2 = arith.constant 0 : index
    %1 = vector.load %arg2[%c0_1, %c0_2] : memref<32x128xf32, #tpu.memory_space<vmem>>, vector<32x128xf32>
    %c0_3 = arith.constant 0 : index
    %c0_4 = arith.constant 0 : index
    %2 = vector.load %arg3[%c0_3, %c0_4] : memref<3x128xf32, #tpu.memory_space<vmem>>, vector<3x128xf32>
    %3 = vector.extract_strided_slice %2 {offsets = [0, 0], sizes = [1, 128], strides = [1, 1]} : vector<3x128xf32> to vector<1x128xf32>
    %4 = vector.extract_strided_slice %2 {offsets = [1, 0], sizes = [1, 128], strides = [1, 1]} : vector<3x128xf32> to vector<1x128xf32>
    %5 = vector.extract_strided_slice %2 {offsets = [2, 0], sizes = [1, 128], strides = [1, 1]} : vector<3x128xf32> to vector<1x128xf32>
    %cst = arith.constant dense<0.000000e+00> : vector<8x128xf32>
    %6 = tpu.matmul %0, %1, %cst {dimension_numbers = #tpu.dot_dimension_numbers<[1], [0], [0], [1], [0, 0, 1, 1], [], []>} : vector<8x32xf32>, vector<32x128xf32>, vector<8x128xf32> -> vector<8x128xf32>
    %7 = vector.broadcast %3 : vector<1x128xf32> to vector<8x128xf32>
    %8 = arith.addf %6, %7 : vector<8x128xf32>
    %cst_5 = arith.constant dense<0.000000e+00> : vector<8xf32>
    %9 = vector.multi_reduction <add>, %8, %cst_5 [1] : vector<8x128xf32> to vector<8xf32>
    %10 = vector.shape_cast %9 : vector<8xf32> to vector<8x1xf32>
    %cst_6 = arith.constant 1.280000e+02 : f32
    %11 = vector.broadcast %cst_6 : f32 to vector<8x1xf32>
    %12 = arith.divf %10, %11 : vector<8x1xf32>
    %13 = vector.broadcast %12 : vector<8x1xf32> to vector<8x128xf32>
    %14 = arith.subf %8, %13 : vector<8x128xf32>
    %15 = arith.mulf %14, %14 : vector<8x128xf32>
    %cst_7 = arith.constant dense<0.000000e+00> : vector<8xf32>
    %16 = vector.multi_reduction <add>, %15, %cst_7 [1] : vector<8x128xf32> to vector<8xf32>
    %17 = vector.shape_cast %16 : vector<8xf32> to vector<8x1xf32>
    %cst_8 = arith.constant 1.280000e+02 : f32
    %18 = vector.broadcast %cst_8 : f32 to vector<8x1xf32>
    %19 = arith.divf %17, %18 : vector<8x1xf32>
    %cst_9 = arith.constant 9.99999974E-6 : f32
    %20 = vector.broadcast %cst_9 : f32 to vector<8x1xf32>
    %21 = arith.addf %19, %20 : vector<8x1xf32>
    %22 = math.rsqrt %21 : vector<8x1xf32>
    %23 = vector.broadcast %22 : vector<8x1xf32> to vector<8x128xf32>
    %24 = vector.broadcast %4 : vector<1x128xf32> to vector<8x128xf32>
    %25 = arith.mulf %23, %24 : vector<8x128xf32>
    %26 = arith.mulf %14, %25 : vector<8x128xf32>
    %27 = vector.broadcast %5 : vector<1x128xf32> to vector<8x128xf32>
    %28 = arith.addf %26, %27 : vector<8x128xf32>
    %cst_10 = arith.constant 0.00999999977 : f32
    %29 = vector.broadcast %cst_10 : f32 to vector<8x128xf32>
    %30 = arith.mulf %29, %28 : vector<8x128xf32>
    %31 = arith.maximumf %28, %30 : vector<8x128xf32>
    %c0_11 = arith.constant 0 : index
    %c0_12 = arith.constant 0 : index
    %32 = vector.load %arg4[%c0_11, %c0_12] : memref<128x16xf32, #tpu.memory_space<vmem>>, vector<128x16xf32>
    %c0_13 = arith.constant 0 : index
    %c0_14 = arith.constant 0 : index
    %33 = vector.load %arg5[%c0_13, %c0_14] : memref<3x16xf32, #tpu.memory_space<vmem>>, vector<3x16xf32>
    %34 = vector.extract_strided_slice %33 {offsets = [0, 0], sizes = [1, 16], strides = [1, 1]} : vector<3x16xf32> to vector<1x16xf32>
    %35 = vector.extract_strided_slice %33 {offsets = [1, 0], sizes = [1, 16], strides = [1, 1]} : vector<3x16xf32> to vector<1x16xf32>
    %36 = vector.extract_strided_slice %33 {offsets = [2, 0], sizes = [1, 16], strides = [1, 1]} : vector<3x16xf32> to vector<1x16xf32>
    %cst_15 = arith.constant dense<0.000000e+00> : vector<8x16xf32>
    %37 = tpu.matmul %31, %32, %cst_15 {dimension_numbers = #tpu.dot_dimension_numbers<[1], [0], [0], [1], [0, 0, 1, 1], [], []>} : vector<8x128xf32>, vector<128x16xf32>, vector<8x16xf32> -> vector<8x16xf32>
    %38 = vector.broadcast %34 : vector<1x16xf32> to vector<8x16xf32>
    %39 = arith.addf %37, %38 : vector<8x16xf32>
    %cst_16 = arith.constant dense<0.000000e+00> : vector<8xf32>
    %40 = vector.multi_reduction <add>, %39, %cst_16 [1] : vector<8x16xf32> to vector<8xf32>
    %41 = vector.shape_cast %40 : vector<8xf32> to vector<8x1xf32>
    %cst_17 = arith.constant 1.600000e+01 : f32
    %42 = vector.broadcast %cst_17 : f32 to vector<8x1xf32>
    %43 = arith.divf %41, %42 : vector<8x1xf32>
    %44 = vector.broadcast %43 : vector<8x1xf32> to vector<8x16xf32>
    %45 = arith.subf %39, %44 : vector<8x16xf32>
    %46 = arith.mulf %45, %45 : vector<8x16xf32>
    %cst_18 = arith.constant dense<0.000000e+00> : vector<8xf32>
    %47 = vector.multi_reduction <add>, %46, %cst_18 [1] : vector<8x16xf32> to vector<8xf32>
    %48 = vector.shape_cast %47 : vector<8xf32> to vector<8x1xf32>
    %cst_19 = arith.constant 1.600000e+01 : f32
    %49 = vector.broadcast %cst_19 : f32 to vector<8x1xf32>
    %50 = arith.divf %48, %49 : vector<8x1xf32>
    %cst_20 = arith.constant 9.99999974E-6 : f32
    %51 = vector.broadcast %cst_20 : f32 to vector<8x1xf32>
    %52 = arith.addf %50, %51 : vector<8x1xf32>
    %53 = math.rsqrt %52 : vector<8x1xf32>
    %54 = vector.broadcast %53 : vector<8x1xf32> to vector<8x16xf32>
    %55 = vector.broadcast %35 : vector<1x16xf32> to vector<8x16xf32>
    %56 = arith.mulf %54, %55 : vector<8x16xf32>
    %57 = arith.mulf %45, %56 : vector<8x16xf32>
    %58 = vector.broadcast %36 : vector<1x16xf32> to vector<8x16xf32>
    %59 = arith.addf %57, %58 : vector<8x16xf32>
    %cst_21 = arith.constant 0.00999999977 : f32
    %60 = vector.broadcast %cst_21 : f32 to vector<8x16xf32>
    %61 = arith.mulf %60, %59 : vector<8x16xf32>
    %62 = arith.maximumf %59, %61 : vector<8x16xf32>
    %cst_22 = arith.constant 0.000000e+00 : f32
    %63 = vector.broadcast %cst_22 : f32 to vector<8x112xf32>
    %64 = tpu.concatenate %62, %63 in 1 : vector<8x16xf32>, vector<8x112xf32> -> vector<8x128xf32>
    %c0_23 = arith.constant 0 : index
    %c0_24 = arith.constant 0 : index
    %65 = vector.load %arg6[%c0_23, %c0_24] : memref<8x128xf32, #tpu.memory_space<vmem>>, vector<8x128xf32>
    tpu.vector_store %arg6[%c0_23, %c0_24], %64 {strides = array<i32>} : memref<8x128xf32, #tpu.memory_space<vmem>>, vector<8x128xf32>,
    return
  }
  func.func @transform_0(%arg0: i32) -> (i32, i32) {
    %c0_i32 = arith.constant 0 : i32
    %c0_i32_0 = arith.constant 0 : i32
    return %arg0, %c0_i32 : i32, i32
  }
  func.func @transform_1(%arg0: i32) -> (i32, i32) {
    %c0_i32 = arith.constant 0 : i32
    %c0_i32_0 = arith.constant 0 : i32
    %c0_i32_1 = arith.constant 0 : i32
    return %c0_i32, %c0_i32_0 : i32, i32
  }
  func.func @transform_2(%arg0: i32) -> (i32, i32) {
    %c0_i32 = arith.constant 0 : i32
    %c0_i32_0 = arith.constant 0 : i32
    %c0_i32_1 = arith.constant 0 : i32
    return %c0_i32, %c0_i32_0 : i32, i32
  }
  func.func @transform_3(%arg0: i32) -> (i32, i32) {
    %c0_i32 = arith.constant 0 : i32
    %c0_i32_0 = arith.constant 0 : i32
    %c0_i32_1 = arith.constant 0 : i32
    return %c0_i32, %c0_i32_0 : i32, i32
  }
  func.func @transform_4(%arg0: i32) -> (i32, i32) {
    %c0_i32 = arith.constant 0 : i32
    %c0_i32_0 = arith.constant 0 : i32
    %c0_i32_1 = arith.constant 0 : i32
    return %c0_i32, %c0_i32_0 : i32, i32
  }
  func.func @transform_5(%arg0: i32) -> (i32, i32) {
    %c0_i32 = arith.constant 0 : i32
    %c0_i32_0 = arith.constant 0 : i32
    return %arg0, %c0_i32 : i32, i32
  }
}

</mosaic_0001>

<bundles_post_ra>
// kernel: mlp_forward.1
= control target key start
LH: loop header
LB: loop body
LE: loop exit
PB: predicated region body
PF: predicated region fallthrough
CT: control target
= control target key end

     0   :  { %v394_v3 = vmov 0.0|0.0   ;;  %vm395_vm0 = vmmov 0   ;;  %v396_v6 = vmov 0.0   ;;  %s531_s0 = inlined_call_operand.vmem [shape: f32[8,32], index: 0, kind: input, shape index: {}]   ;;  %s532_s1 = inlined_call_operand.vmem [shape: f32[32,128], index: 1, kind: input, shape index: {}]   ;;  %s533_s2 = inlined_call_operand.vmem [shape: f32[3,128], index: 2, kind: input, shape index: {}]   ;;  %s534_s3 = inlined_call_operand.vmem [shape: f32[128,16], index: 3, kind: input, shape index: {}]   ;;  %s535_s4 = inlined_call_operand.vmem [shape: f32[3,16], index: 4, kind: input, shape index: {}]   ;;  %s536_s5 = inlined_call_operand.hbm [shape: f32[8,128], index: 5, kind: output, shape index: {}]  }
   0x1   :  { %v22_v0 = vld [vmem:[%s532_s1] sm:$0xff]  ;;  %v23_v1 = vld [vmem:[%s532_s1 + $0x8] sm:$0xff]  ;;  %v24_v2 = vld [vmem:[%s532_s1 + $0x10] sm:$0xff]  ;;  %332 = vmatprep.subr.bf16.mxu0 %v394_v3  ;;  %294 = vmatprep.mubr.msk.f32.mxu0 %vm395_vm0, %v396_v6 }
   0x2   :  { %v333_v4 = vpack.c.bf16 %v23_v1, %v22_v0  ;;  %v25_v5 = vld [vmem:[%s532_s1 + $0x18] sm:$0xff]  ;;  %338 = vmatprep.subr.bf16.mxu1 %v394_v3  ;;  %329 = vmatprep.mubr.msk.f32.mxu1 %vm395_vm0, %v396_v6 }
   0x3   :  { %10 = vsyncpa [#allocation3], 0  ;;  %v336_v7 = vpack.c.bf16 %v25_v5, %v24_v2  ;;  %v21_v8 = vld [vmem:[%s531_s0] sm:$0xff]  ;;  %vm31_vm1 = vcmask 261120   ;;  %v27_v9 = vlaneseq  ;;  %v130_v18 = vld [vmem:[%s534_s3 + $0x8] sm:$0xff]  ;;  %vm220_vm2 = vcmask 130048  }
   0x4   :  { %334 = vmatpush3.bf16.msra.mxu0 %v333_v4  ;;  %v26_v12 = vld [vmem:[%s533_s2] sm:$0x7]  ;;  %v131_v19 = vld [vmem:[%s534_s3 + $0x10] sm:$0xff]  ;;  %v132_v21 = vld [vmem:[%s534_s3 + $0x18] sm:$0xff] }
   0x5   :  { %335 = vmatprep.subr.bf16.mxu0 %v394_v3  ;;  %v446_v10 = vshrl.u32 %v27_v9, 7  ;;  %v129_v17 = vld [vmem:[%s534_s3] sm:$0xff]  ;;  %v342_v22 = vpack.c.bf16 %v132_v21, %v131_v19  ;;  %v134_v28 = vld [vmem:[%s534_s3 + $0x28] sm:$0xff]  ;;  %v135_v30 = vld [vmem:[%s534_s3 + $0x30] sm:$0xff] }
   0x6   :  { %v339_v20 = vpack.c.bf16 %v130_v18, %v129_v17  ;;  %v133_v27 = vld [vmem:[%s534_s3 + $0x20] sm:$0xff]  ;;  %v136_v31 = vld [vmem:[%s534_s3 + $0x38] sm:$0xff]  ;;  %v138_v34 = vld [vmem:[%s534_s3 + $0x48] sm:$0xff] }
   0x7   :  { %v29_v11 = vsub.s32 0, %v446_v10  ;;  %v345_v29 = vpack.c.bf16 %v134_v28, %v133_v27  ;;  %v348_v32 = vpack.c.bf16 %v136_v31, %v135_v30  ;;  %v137_v33 = vld [vmem:[%s534_s3 + $0x40] sm:$0xff]  ;;  %v139_v36 = vld [vmem:[%s534_s3 + $0x50] sm:$0xff]  ;;  %v140_v37 = vld [vmem:[%s534_s3 + $0x58] sm:$0xff]  ;;  %v118_v48 = vsub.s32 1, %v446_v10 }
   0x8   :  { %337 = vmatpush3.bf16.msra.mxu0 %v336_v7  ;;  %340 = vmatpush3.bf16.msra.mxu1 %v339_v20  ;;  %v351_v35 = vpack.c.bf16 %v138_v34, %v137_v33  ;;  %v354_v38 = vpack.c.bf16 %v140_v37, %v139_v36  ;;  %v141_v39 = vld [vmem:[%s534_s3 + $0x60] sm:$0xff]  ;;  %v142_v40 = vld [vmem:[%s534_s3 + $0x68] sm:$0xff]  ;;  %v143_v42 = vld [vmem:[%s534_s3 + $0x70] sm:$0xff]  ;;  %v124_v50 = vsub.s32 2, %v446_v10 }
   0x9   :  { %v30_v13 = vrot.slane %v26_v12, %v29_v11  ;;  %341 = vmatprep.subr.bf16.mxu1 %v394_v3  ;;  %v357_v41 = vpack.c.bf16 %v142_v40, %v141_v39  ;;  %v144_v43 = vld [vmem:[%s534_s3 + $0x78] sm:$0xff]  ;;  %v119_v49 = vrot.slane %v26_v12, %v118_v48  ;;  %v145_v58 = vld [vmem:[%s535_s4] sm:$0x7]  ;;  %s397_s4 = smov [#allocation2]  }
   0xa   :  { %v360_v44 = vpack.c.bf16 %v144_v43, %v143_v42  ;;  %v125_v52 = vrot.slane %v26_v12, %v124_v50  ;;  %v149_v59 = vrot.slane %v145_v58, %v29_v11  ;;  %v243_v10 = vrot.slane %v145_v58, %v124_v50  ;;  %s255_s8 = sshll.u32 %s397_s4, 4  ;;  %s256_s8 = int_to_ptr.vmem [resolvable:$true] %s255_s8 }
   0xb   :  { %295 = vmatmul.mubr.msk.f32.vlgmr.msra.gmra.mrb[0].mxu0 %vm31_vm1, %v21_v8  ;;  %v237_v8 = vrot.slane %v145_v58, %v118_v48  ;;  %s370_s2 = scalar_lea.vmem %s256_s8, 128  ;;  %p375_p1 = scmp.lt.s32.totalorder %s256_s8, %s256_s8 }
   0xc   :  { %343 = vmatpush3.bf16.msra.mxu1 %v342_v22  ;;  %p371_p0 = scmp.ne.s32.totalorder %s256_s8, %s370_s2  ;;  %p376_p2 = scmp.lt.s32.totalorder %s370_s2, %s370_s2 }
   0xd   :  { %344 = vmatprep.subr.bf16.mxu1 %v394_v3 }
   0xe   :  { %p377_p3 = por %p376_p2, %p375_p1 }
  0x10   :  { %346 = vmatpush3.bf16.msra.mxu1 %v345_v29  ;;  %p378_p4 = pnand %p377_p3, %p371_p0 }
  0x11   :  { %347 = vmatprep.subr.bf16.mxu1 %v394_v3 }
  0x14   :  { %349 = vmatpush3.bf16.msra.mxu1 %v348_v32 }
  0x15   :  { %350 = vmatprep.subr.bf16.mxu1 %v394_v3 }
  0x18   :  { %352 = vmatpush3.bf16.msra.mxu1 %v351_v35 }
  0x19   :  { %353 = vmatprep.subr.bf16.mxu1 %v394_v3 }
  0x1c   :  { %355 = vmatpush3.bf16.msra.mxu1 %v354_v38 }
  0x1d   :  { %356 = vmatprep.subr.bf16.mxu1 %v394_v3 }
  0x20   :  { %358 = vmatpush3.bf16.msra.mxu1 %v357_v41 }
  0x21   :  { %359 = vmatprep.subr.bf16.mxu1 %v394_v3 }
  0x24   :  { %361 = vmatpush3.bf16.msra.mxu1 %v360_v44 }
  0xde   :  { %v101_v14 = vpop.f32.mrb[0].mxu0 }
  0xdf   :  { %v102_v15 = vadd.f32 %v101_v14, %v30_v13  ;;  %v296_v16 = vpop.f32.mrb[1].mxu0 }
  0xe1   :  { %105 = vadd.xlane.f32.xlu0 %v102_v15 }
 0x16e   :  { %v106_v23 = vpop.xlane.xlu0 %105 }
 0x16f   :  { %v108_v24 = vmul.f32 0.0078125, %v106_v23 }
 0x171   :  { %v109_v25 = vsub.f32 %v102_v15, %v108_v24 }
 0x173   :  { %v110_v26 = vmul.f32 %v109_v25, %v109_v25 }
 0x175   :  { %111 = vadd.xlane.f32.xlu0 %v110_v26 }
 0x202   :  { %v112_v45 = vpop.xlane.xlu0 %111 }
 0x203   :  { %v113_v46 = vmul.f32 0.0078125, %v112_v45 }
 0x205   :  { %v114_v47 = vadd.f32 1e-05, %v113_v46 }
 0x207   :  { %366 = vrsqrt.f32 %v114_v47 }
 0x211   :  { %v367_v51 = vpop.eup %366 }
 0x212   :  { %v120_v53 = vmul.f32 %v367_v51, %v119_v49 }
 0x214   :  { %v121_v54 = vmul.f32 %v120_v53, %v109_v25 }
 0x216   :  { %v126_v55 = vadd.f32 %v125_v52, %v121_v54 }
 0x218   :  { %v127_v56 = vmul.f32 0.01, %v126_v55 }
 0x21a   :  { %v128_v57 = vmax.f32 %v126_v55, %v127_v56 }
 0x21c   :  { %330 = vmatmul.mubr.f32.vlgmr.msra.gmra.mrb[0].mxu1 %v128_v57 }
 0x2ef   :  { %v216_v60 = vpop.f32.mrb[0].mxu1 }
 0x2f0   :  { %v217_v61 = vadd.f32 %v216_v60, %v149_v59  ;;  %v331_v62 = vpop.f32.mrb[1].mxu1 }
 0x2f2   :  { %v221_v63 = vsel %vm220_vm2, %v217_v61, 0.0 }
 0x2f3   :  { %222 = vadd.xlane.f32.xlu1 %v221_v63 }
 0x380   :  { %v223_v0 = vpop.xlane.xlu1 %222 }
 0x381   :  { %v225_v1 = vmul.f32 0.0625, %v223_v0 }
 0x383   :  { %v226_v2 = vsub.f32 %v217_v61, %v225_v1 }
 0x385   :  { %v227_v3 = vmul.f32 %v226_v2, %v226_v2 }
 0x387   :  { %v228_v4 = vsel %vm220_vm2, %v227_v3, 0.0 }
 0x388   :  { %229 = vadd.xlane.f32.xlu1 %v228_v4 }
 0x415   :  { %v230_v5 = vpop.xlane.xlu1 %229 }
 0x416   :  { %v231_v6 = vmul.f32 0.0625, %v230_v5 }
 0x418   :  { %v232_v7 = vadd.f32 1e-05, %v231_v6 }
 0x41a   :  { %368 = vrsqrt.f32 %v232_v7 }
 0x424   :  { %v369_v9 = vpop.eup %368 }
 0x425   :  { %v238_v11 = vmul.f32 %v369_v9, %v237_v8 }
 0x427   :  { %v239_v12 = vmul.f32 %v238_v11, %v226_v2 }
 0x429   :  { %v244_v13 = vadd.f32 %v243_v10, %v239_v12 }
 0x42b   :  { %v245_v14 = vmul.f32 0.01, %v244_v13 }
 0x42d   :  { %v246_v15 = vmax.f32 %v244_v13, %v245_v14 }
 0x42f   :  { %v247_v16 = vsel %vm220_vm2, %v246_v15, 0.0 }
 0x430   :  { %248 = vst [vmem:[#allocation2] sm:$0xff] %v247_v16 }
 0x431   :  { %381 = shalt.err (!%p378_p4)
}
 0x432   :  { %s382_s11 = scalar_lea.hbm %s536_s5, 128 }
 0x433   :  { %p383_p5 = scmp.ne.s32.totalorder %s536_s5, %s382_s11  ;;  %p386_p6 = scmp.lt.u32.totalorder %s382_s11, %s536_s5 }
 0x435   :  { %p388_p7 = pnand %p386_p6, %p383_p5 }
 0x437   :  { %391 = shalt.err (!%p388_p7)
}
 0x438   :  { %258 = dma.vmem_to_hbm [thread:$0]  %s256_s8, 128, %s536_s5, [#allocation3]  }
 0x439   :  { %392 = dma.done.wait [#allocation3], 128  }
 0x43a   :  { %393 = vsyncadd [#allocation3], 4294967168 }
 0x43b   :  { %262 = vsyncpa [#allocation3], 1 }

</bundles_post_ra>
